<compile_context>
chip_gen: v5e
topology: v5e:2x2
jax: 0.10.0
libtpu: 0.0.40
codegen_flags: <defaults>
</compile_context>

<pallas_src>
import functools

import jax
import jax.numpy as jnp
from jax import lax
from jax.experimental import pallas as pl
from jax.experimental.pallas import tpu as pltpu

LANE = 128  # pad output channels to this for lane-dense stores / full MXU N


# ---------------------------------------------------------------------------
# Generation-aware configuration (evaluated eagerly, cached)
# ---------------------------------------------------------------------------
@functools.lru_cache(maxsize=None)
def _tpu_vmem_limit_bytes():
    """~3/4 of physical VMEM: 48 MiB on v7x (64 MiB), 96 MiB on v5e/v6e."""
    try:
        cap = int(pltpu.get_tpu_info().vmem_capacity_bytes)
    except Exception:
        cap = 64 * 1024 * 1024  # conservative fallback (safe on every chip)
    return (cap // 4) * 3


@functools.lru_cache(maxsize=None)
def _weights_single_buffer_ok():
    """Probe once whether pipeline_mode=pl.Buffered(1) is accepted."""
    try:
        def k(x_ref, w_ref, o_ref):
            o_ref[...] = x_ref[...] + w_ref[...]

        x = jnp.zeros((16, 128), jnp.float32)
        w = jnp.zeros((8, 128), jnp.float32)
        out = pl.pallas_call(
            k,
            out_shape=jax.ShapeDtypeStruct((16, 128), jnp.float32),
            grid=(2,),
            in_specs=[
                pl.BlockSpec((8, 128), lambda i: (i, 0)),
                pl.BlockSpec((8, 128), lambda i: (0, 0),
                             pipeline_mode=pl.Buffered(1)),
            ],
            out_specs=pl.BlockSpec((8, 128), lambda i: (i, 0)),
        )(x, w)
        jax.block_until_ready(out)
        return True
    except Exception:
        return False


# ---------------------------------------------------------------------------
# Pallas kernel: sum_i (tm, K_i) @ (K_i, Cp) + bias, ReLU.  Cp multiple of 128.
# n_inputs == 1 serves conv1 (BN1 folded into W1); n_inputs == 2 serves the
# fused conv2 + residual matmul (no host-side K concatenation needed).
# ---------------------------------------------------------------------------
def _make_fused_kernel(n_inputs):
    def kernel(*refs):
        p_refs = refs[:n_inputs]
        w_refs = refs[n_inputs:2 * n_inputs]
        b_ref = refs[2 * n_inputs]
        o_ref = refs[2 * n_inputs + 1]
        acc = jnp.dot(p_refs[0][...], w_refs[0][...],
                      preferred_element_type=jnp.float32)
        for p_ref, w_ref in zip(p_refs[1:], w_refs[1:]):
            acc = acc + jnp.dot(p_ref[...], w_ref[...],
                                preferred_element_type=jnp.float32)
        o_ref[...] = jnp.maximum(acc + b_ref[...], 0.0).astype(o_ref.dtype)
    return kernel


def _round_up(x, m):
    return ((x + m - 1) // m) * m


def _choose_tm(m, ks, cp, in_bytes, out_bytes, block_m, vmem_limit,
               single_buffer_weights, min_steps=4):
    """M tile: as large as block_m / the VMEM budget allows, then shrunk so the
    grid has >= min_steps steps (pipeline depth + v7x megacore sharding)."""
    ktot = sum(ks)
    w_bufs = 1 if single_buffer_weights else 2
    resident = w_bufs * (ktot * cp * in_bytes + cp * 4)      # weights + f32 bias
    per_row = 2 * (ktot * in_bytes + cp * out_bytes)         # dbl-buffered P + out
    budget = max(vmem_limit - resident - (4 << 20), per_row * 8)
    tm_cap = max(8, (budget // per_row) // 8 * 8)
    tm = min(block_m, tm_cap, _round_up(m, 8))
    while tm > 8 and pl.cdiv(m, tm) < min_steps:
        tm = max(8, _round_up(tm // 2, 8))
    return int(tm)


def fused_matmul_bias_relu(ps, ws, bias, *, tm, out_dtype, vmem_limit,
                           single_buffer_weights):
    """out[M, Cp] = relu(sum_i ps[i] @ ws[i] + bias), M tiled with a cdiv grid."""
    n = len(ps)
    M = ps[0].shape[0]
    Cp = ws[0].shape[1]
    assert Cp % LANE == 0 and bias.shape == (1, Cp)
    for p, w in zip(ps, ws):
        assert p.shape[0] == M and p.shape[1] == w.shape[0] and w.shape[1] == Cp

    grid = (pl.cdiv(M, tm),)

    def resident_spec(shape):
        # Block never changes across the grid -> single-buffer it when supported
        # (saves a duplicate weight copy in VMEM; matters most on v7x's 64 MiB).
        if single_buffer_weights:
            return pl.BlockSpec(shape, lambda i: (0,) * len(shape),
                                pipeline_mode=pl.Buffered(1))
        return pl.BlockSpec(shape, lambda i: (0,) * len(shape))

    in_specs = (
        [pl.BlockSpec((tm, p.shape[1]), lambda i: (i, 0)) for p in ps]  # M-tiled
        + [resident_spec(w.shape) for w in ws]                          # resident
        + [resident_spec(bias.shape)]                                   # resident
    )

    flops = 2 * M * sum(p.shape[1] for p in ps) * Cp
    bytes_accessed = (
        sum(p.size * p.dtype.itemsize for p in ps)
        + sum(w.size * w.dtype.itemsize for w in ws)
        + bias.size * bias.dtype.itemsize
        + M * Cp * jnp.dtype(out_dtype).itemsize
    )

    return pl.pallas_call(
        _make_fused_kernel(n),
        out_shape=jax.ShapeDtypeStruct((M, Cp), out_dtype),
        grid=grid,
        in_specs=in_specs,
        out_specs=pl.BlockSpec((tm, Cp), lambda i: (i, 0)),
        compiler_params=pltpu.CompilerParams(
            dimension_semantics=("parallel",),          # shard M across TCs (v7x)
            vmem_limit_bytes=vmem_limit,                # generation-aware
        ),
        cost_estimate=pl.CostEstimate(flops=int(flops), transcendentals=0,
                                      bytes_accessed=int(bytes_accessed)),
    )(*ps, *ws, bias)


# ---------------------------------------------------------------------------
# Glue: im2col, BN folding, weight reshapes / padding (plain JAX, under jit)
# ---------------------------------------------------------------------------
def im2col(x_nhwc, ksize, stride, pad):
    N, H, W, C = x_nhwc.shape
    xp = jnp.pad(x_nhwc, ((0, 0), (pad, pad), (pad, pad), (0, 0)))
    Ho = (H + 2 * pad - ksize) // stride + 1
    Wo = (W + 2 * pad - ksize) // stride + 1
    cols = []
    for ky in range(ksize):
        for kx in range(ksize):
            patch = lax.slice(
                xp,
                (0, ky, kx, 0),
                (N, ky + stride * (Ho - 1) + 1, kx + stride * (Wo - 1) + 1, C),
                (1, stride, stride, 1),
            )
            cols.append(patch.reshape(N * Ho * Wo, C))
    return jnp.concatenate(cols, axis=1), (N, Ho, Wo)


def fold_bn(gamma, beta, mean, var, eps=1e-5):
    scale = gamma / jnp.sqrt(var + eps)
    bias = beta - mean * scale
    return scale, bias


def w_oihw_to_mat(w):
    # (Cout, Cin, KH, KW) -> (KH*KW*Cin, Cout), matching im2col column order
    Cout, Cin, KH, KW = w.shape
    return jnp.transpose(w, (2, 3, 1, 0)).reshape(KH * KW * Cin, Cout)


def _pad_lanes(a, cp):
    pad = cp - a.shape[-1]
    return a if pad == 0 else jnp.pad(a, ((0, 0), (0, pad)))


@functools.partial(
    jax.jit,
    static_argnames=("compute_dtype", "block_m", "vmem_limit",
                     "single_buffer_weights"))
def _residual_block_forward(x_nchw, params, *, compute_dtype, block_m,
                            vmem_limit, single_buffer_weights):
    # NCHW -> NHWC, cast ONCE before im2col so the 9x-amplified patch matrices
    # are built (and written / re-read) at compute_dtype width.
    x = jnp.transpose(x_nchw, (0, 2, 3, 1)).astype(compute_dtype)
    N, H, W, Cin = x.shape
    Cout = params["w1"].shape[0]
    Cp = _round_up(Cout, LANE)
    in_b = jnp.dtype(compute_dtype).itemsize

    s1, b1 = fold_bn(*params["bn1"])
    s2, b2 = fold_bn(*params["bn2"])

    # conv1 weights: fold BN1 scale, pad Cout -> 128 lanes; f32 bias epilogue.
    W1 = _pad_lanes(w_oihw_to_mat(params["w1"]) * s1[None, :], Cp).astype(compute_dtype)
    b1p = _pad_lanes(b1[None, :], Cp)

    # conv2 (BN2 scale folded) and residual weights stay separate operands.
    W2 = _pad_lanes(w_oihw_to_mat(params["w2"]) * s2[None, :], Cp).astype(compute_dtype)
    Wr = _pad_lanes(w_oihw_to_mat(params["wr"]), Cp).astype(compute_dtype)
    b2p = _pad_lanes(b2[None, :], Cp)

    # ---- conv1: 3x3 s2 p1 -> fused matmul + BN1 + ReLU (output in compute dtype) ----
    P1, (_, Ho, Wo) = im2col(x, 3, 2, 1)
    M = N * Ho * Wo
    tm1 = _choose_tm(M, (P1.shape[1],), Cp, in_b, in_b, block_m, vmem_limit,
                     single_buffer_weights)
    Y1 = fused_matmul_bias_relu([P1], [W1], b1p, tm=tm1, out_dtype=compute_dtype,
                                vmem_limit=vmem_limit,
                                single_buffer_weights=single_buffer_weights)
    if Cout == Cp:
        y1 = Y1.reshape(N, Ho, Wo, Cout)        # lane-aligned: no slice pass at all
    else:
        y1 = Y1[:, :Cout].reshape(N, Ho, Wo, Cout)

    # ---- conv2 (3x3 s1 p1) + BN2 + residual (1x1 s2) + ReLU, ONE kernel ----
    # No host concat: P2 and Pres go in as two operands, summed in-kernel.
    P2, _ = im2col(y1, 3, 1, 1)
    Pres = x[:, ::2, ::2, :].reshape(M, Cin)
    tm2 = _choose_tm(M, (P2.shape[1], Cin), Cp, in_b, 4, block_m, vmem_limit,
                     single_buffer_weights)
    Y = fused_matmul_bias_relu([P2, Pres], [W2, Wr], b2p, tm=tm2,
                               out_dtype=jnp.float32, vmem_limit=vmem_limit,
                               single_buffer_weights=single_buffer_weights)
    y = Y[:, :Cout].reshape(N, Ho, Wo, Cout)
    return jnp.transpose(y, (0, 3, 1, 2))       # back to NCHW


def residual_block_forward(x_nchw, params, *, compute_dtype=jnp.bfloat16,
                           block_m=None):
    vmem_limit = _tpu_vmem_limit_bytes()
    if block_m is None:
        block_m = 1024 if vmem_limit >= (80 << 20) else 512  # v5e/v6e vs v7x
    single_buffer = _weights_single_buffer_ok()
    return _residual_block_forward(
        x_nchw, params, compute_dtype=compute_dtype, block_m=block_m,
        vmem_limit=vmem_limit, single_buffer_weights=single_buffer)


# ---------------------------------------------------------------------------
# Pure-JAX reference (lax.conv in NCHW, mirrors the PyTorch module)
# ---------------------------------------------------------------------------
def ref_forward(x, params, eps=1e-5):
    dn = ("NCHW", "OIHW", "NCHW")

    def conv(inp, w, stride, pad):
        return lax.conv_general_dilated(
            inp, w, (stride, stride), [(pad, pad), (pad, pad)],
            dimension_numbers=dn, precision=lax.Precision.HIGHEST,
        )

    def bn(y, p):
        g, b, m, v = p
        return ((y - m[None, :, None, None]) / jnp.sqrt(v[None, :, None, None] + eps)
                * g[None, :, None, None] + b[None, :, None, None])

    residual = conv(x, params["wr"], 2, 0)
    h = jnp.maximum(bn(conv(x, params["w1"], 2, 1), params["bn1"]), 0.0)
    h = bn(conv(h, params["w2"], 1, 1), params["bn2"])
    return jnp.maximum(h + residual, 0.0)


# ---------------------------------------------------------------------------
if __name__ == "__main__":
    N, Cin, Cout, H, W = 2, 4, 8, 16, 16

    key = jax.random.PRNGKey(0)
    ks = jax.random.split(key, 6)

    x = jax.random.normal(ks[0], (N, Cin, H, W), jnp.float32)

    def bn_params(k):
        k1, k2, k3, k4 = jax.random.split(k, 4)
        gamma = 1.0 + 0.1 * jax.random.normal(k1, (Cout,), jnp.float32)
        beta = 0.1 * jax.random.normal(k2, (Cout,), jnp.float32)
        mean = 0.1 * jax.random.normal(k3, (Cout,), jnp.float32)
        var = jax.random.uniform(k4, (Cout,), jnp.float32, 0.5, 1.5)
        return (gamma, beta, mean, var)

    params = {
        "w1": 0.1 * jax.random.normal(ks[1], (Cout, Cin, 3, 3), jnp.float32),
        "w2": 0.1 * jax.random.normal(ks[2], (Cout, Cout, 3, 3), jnp.float32),
        "wr": 0.1 * jax.random.normal(ks[3], (Cout, Cin, 1, 1), jnp.float32),
        "bn1": bn_params(ks[4]),
        "bn2": bn_params(ks[5]),
    }

    ref = jax.block_until_ready(ref_forward(x, params))

    # f32 operand path, tight check (multi-step pipelined grid via _choose_tm).
    out_f32 = jax.block_until_ready(
        residual_block_forward(x, params, compute_dtype=jnp.float32))
    assert out_f32.shape == (N, Cout, H // 2, W // 2), out_f32.shape
    assert jnp.allclose(out_f32, ref, atol=1e-2, rtol=1e-2), \
        float(jnp.max(jnp.abs(out_f32 - ref)))

    # bf16 MXU operands (v6e/v7x fast path), f32 accumulation + f32 epilogue.
    out_bf16 = jax.block_until_ready(
        residual_block_forward(x, params, compute_dtype=jnp.bfloat16))
    assert out_bf16.shape == (N, Cout, H // 2, W // 2), out_bf16.shape
    assert jnp.allclose(out_bf16, ref, atol=5e-2, rtol=5e-2), \
        float(jnp.max(jnp.abs(out_bf16 - ref)))

    print("KERNEL_OK")
</pallas_src>

<mosaic_0001>
module attributes {stable_mosaic.version = 11 : i64} {
  func.func @k(%arg0: i32, %arg1: memref<8x128xf32, #tpu.memory_space<vmem>>, %arg2: memref<8x128xf32, #tpu.memory_space<vmem>>, %arg3: memref<8x128xf32, #tpu.memory_space<vmem>>) attributes {dimension_semantics = [#tpu.dimension_semantics<arbitrary>], iteration_bounds = array<i64: 2>, scalar_prefetch = 0 : i64, scratch_operands = 0 : i64, tpu.core_type = #tpu.core_type<tc>, window_params = [{transform_indices = @transform_0, window_bounds = array<i64: 8, 128>}, {pipeline_mode = #tpu.pipeline_mode<synchronous>, transform_indices = @transform_1, window_bounds = array<i64: 8, 128>}, {transform_indices = @transform_2, window_bounds = array<i64: 8, 128>}]} {
    %c0 = arith.constant 0 : index
    %c0_0 = arith.constant 0 : index
    %0 = vector.load %arg1[%c0, %c0_0] : memref<8x128xf32, #tpu.memory_space<vmem>>, vector<8x128xf32>
    %c0_1 = arith.constant 0 : index
    %c0_2 = arith.constant 0 : index
    %1 = vector.load %arg2[%c0_1, %c0_2] : memref<8x128xf32, #tpu.memory_space<vmem>>, vector<8x128xf32>
    %2 = arith.addf %0, %1 : vector<8x128xf32>
    %c0_3 = arith.constant 0 : index
    %c0_4 = arith.constant 0 : index
    %3 = vector.load %arg3[%c0_3, %c0_4] : memref<8x128xf32, #tpu.memory_space<vmem>>, vector<8x128xf32>
    tpu.vector_store %arg3[%c0_3, %c0_4], %2 {strides = array<i32>} : memref<8x128xf32, #tpu.memory_space<vmem>>, vector<8x128xf32>,
    return
  }
  func.func @transform_0(%arg0: i32) -> (i32, i32) {
    %c0_i32 = arith.constant 0 : i32
    %c0_i32_0 = arith.constant 0 : i32
    return %arg0, %c0_i32 : i32, i32
  }
  func.func @transform_1(%arg0: i32) -> (i32, i32) {
    %c0_i32 = arith.constant 0 : i32
    %c0_i32_0 = arith.constant 0 : i32
    %c0_i32_1 = arith.constant 0 : i32
    return %c0_i32, %c0_i32_0 : i32, i32
  }
  func.func @transform_2(%arg0: i32) -> (i32, i32) {
    %c0_i32 = arith.constant 0 : i32
    %c0_i32_0 = arith.constant 0 : i32
    return %arg0, %c0_i32 : i32, i32
  }
}

module attributes {stable_mosaic.version = 11 : i64} {
  func.func @kernel(%arg0: i32, %arg1: memref<32x36xf32, #tpu.memory_space<vmem>>, %arg2: memref<36x128xf32, #tpu.memory_space<vmem>>, %arg3: memref<1x128xf32, #tpu.memory_space<vmem>>, %arg4: memref<32x128xf32, #tpu.memory_space<vmem>>) attributes {dimension_semantics = [#tpu.dimension_semantics<parallel>], iteration_bounds = array<i64: 4>, scalar_prefetch = 0 : i64, scratch_operands = 0 : i64, tpu.core_type = #tpu.core_type<tc>, window_params = [{transform_indices = @transform_0, window_bounds = array<i64: 32, 36>}, {pipeline_mode = #tpu.pipeline_mode<synchronous>, transform_indices = @transform_1, window_bounds = array<i64: 36, 128>}, {pipeline_mode = #tpu.pipeline_mode<synchronous>, transform_indices = @transform_2, window_bounds = array<i64: 1, 128>}, {transform_indices = @transform_3, window_bounds = array<i64: 32, 128>}]} {
    %c0 = arith.constant 0 : index
    %c0_0 = arith.constant 0 : index
    %0 = vector.load %arg1[%c0, %c0_0] : memref<32x36xf32, #tpu.memory_space<vmem>>, vector<32x36xf32>
    %c0_1 = arith.constant 0 : index
    %c0_2 = arith.constant 0 : index
    %1 = vector.load %arg2[%c0_1, %c0_2] : memref<36x128xf32, #tpu.memory_space<vmem>>, vector<36x128xf32>
    %cst = arith.constant dense<0.000000e+00> : vector<32x128xf32>
    %2 = tpu.matmul %0, %1, %cst {dimension_numbers = #tpu.dot_dimension_numbers<[1], [0], [0], [1], [0, 0, 1, 1], [], []>} : vector<32x36xf32>, vector<36x128xf32>, vector<32x128xf32> -> vector<32x128xf32>
    %c0_3 = arith.constant 0 : index
    %c0_4 = arith.constant 0 : index
    %3 = vector.load %arg3[%c0_3, %c0_4] : memref<1x128xf32, #tpu.memory_space<vmem>>, vector<1x128xf32>
    %4 = vector.broadcast %3 : vector<1x128xf32> to vector<32x128xf32>
    %5 = arith.addf %2, %4 : vector<32x128xf32>
    %cst_5 = arith.constant 0.000000e+00 : f32
    %6 = vector.broadcast %cst_5 : f32 to vector<32x128xf32>
    %7 = arith.maximumf %5, %6 : vector<32x128xf32>
    %c0_6 = arith.constant 0 : index
    %c0_7 = arith.constant 0 : index
    %8 = vector.load %arg4[%c0_6, %c0_7] : memref<32x128xf32, #tpu.memory_space<vmem>>, vector<32x128xf32>
    tpu.vector_store %arg4[%c0_6, %c0_7], %7 {strides = array<i32>} : memref<32x128xf32, #tpu.memory_space<vmem>>, vector<32x128xf32>,
    return
  }
  func.func @transform_0(%arg0: i32) -> (i32, i32) {
    %c0_i32 = arith.constant 0 : i32
    %c0_i32_0 = arith.constant 0 : i32
    return %arg0, %c0_i32 : i32, i32
  }
  func.func @transform_1(%arg0: i32) -> (i32, i32) {
    %c0_i32 = arith.constant 0 : i32
    %c0_i32_0 = arith.constant 0 : i32
    %c0_i32_1 = arith.constant 0 : i32
    return %c0_i32, %c0_i32_0 : i32, i32
  }
  func.func @transform_2(%arg0: i32) -> (i32, i32) {
    %c0_i32 = arith.constant 0 : i32
    %c0_i32_0 = arith.constant 0 : i32
    %c0_i32_1 = arith.constant 0 : i32
    return %c0_i32, %c0_i32_0 : i32, i32
  }
  func.func @transform_3(%arg0: i32) -> (i32, i32) {
    %c0_i32 = arith.constant 0 : i32
    %c0_i32_0 = arith.constant 0 : i32
    return %arg0, %c0_i32 : i32, i32
  }
}

module attributes {stable_mosaic.version = 11 : i64} {
  func.func @kernel(%arg0: i32, %arg1: memref<32x72xf32, #tpu.memory_space<vmem>>, %arg2: memref<32x4xf32, #tpu.memory_space<vmem>>, %arg3: memref<72x128xf32, #tpu.memory_space<vmem>>, %arg4: memref<4x128xf32, #tpu.memory_space<vmem>>, %arg5: memref<1x128xf32, #tpu.memory_space<vmem>>, %arg6: memref<32x128xf32, #tpu.memory_space<vmem>>) attributes {dimension_semantics = [#tpu.dimension_semantics<parallel>], iteration_bounds = array<i64: 4>, scalar_prefetch = 0 : i64, scratch_operands = 0 : i64, tpu.core_type = #tpu.core_type<tc>, window_params = [{transform_indices = @transform_0, window_bounds = array<i64: 32, 72>}, {transform_indices = @transform_1, window_bounds = array<i64: 32, 4>}, {pipeline_mode = #tpu.pipeline_mode<synchronous>, transform_indices = @transform_2, window_bounds = array<i64: 72, 128>}, {pipeline_mode = #tpu.pipeline_mode<synchronous>, transform_indices = @transform_3, window_bounds = array<i64: 4, 128>}, {pipeline_mode = #tpu.pipeline_mode<synchronous>, transform_indices = @transform_4, window_bounds = array<i64: 1, 128>}, {transform_indices = @transform_5, window_bounds = array<i64: 32, 128>}]} {
    %c0 = arith.constant 0 : index
    %c0_0 = arith.constant 0 : index
    %0 = vector.load %arg1[%c0, %c0_0] : memref<32x72xf32, #tpu.memory_space<vmem>>, vector<32x72xf32>
    %c0_1 = arith.constant 0 : index
    %c0_2 = arith.constant 0 : index
    %1 = vector.load %arg3[%c0_1, %c0_2] : memref<72x128xf32, #tpu.memory_space<vmem>>, vector<72x128xf32>
    %cst = arith.constant dense<0.000000e+00> : vector<32x128xf32>
    %2 = tpu.matmul %0, %1, %cst {dimension_numbers = #tpu.dot_dimension_numbers<[1], [0], [0], [1], [0, 0, 1, 1], [], []>} : vector<32x72xf32>, vector<72x128xf32>, vector<32x128xf32> -> vector<32x128xf32>
    %c0_3 = arith.constant 0 : index
    %c0_4 = arith.constant 0 : index
    %3 = vector.load %arg2[%c0_3, %c0_4] : memref<32x4xf32, #tpu.memory_space<vmem>>, vector<32x4xf32>
    %c0_5 = arith.constant 0 : index
    %c0_6 = arith.constant 0 : index
    %4 = vector.load %arg4[%c0_5, %c0_6] : memref<4x128xf32, #tpu.memory_space<vmem>>, vector<4x128xf32>
    %cst_7 = arith.constant dense<0.000000e+00> : vector<32x128xf32>
    %5 = tpu.matmul %3, %4, %cst_7 {dimension_numbers = #tpu.dot_dimension_numbers<[1], [0], [0], [1], [0, 0, 1, 1], [], []>} : vector<32x4xf32>, vector<4x128xf32>, vector<32x128xf32> -> vector<32x128xf32>
    %6 = arith.addf %2, %5 : vector<32x128xf32>
    %c0_8 = arith.constant 0 : index
    %c0_9 = arith.constant 0 : index
    %7 = vector.load %arg5[%c0_8, %c0_9] : memref<1x128xf32, #tpu.memory_space<vmem>>, vector<1x128xf32>
    %8 = vector.broadcast %7 : vector<1x128xf32> to vector<32x128xf32>
    %9 = arith.addf %6, %8 : vector<32x128xf32>
    %cst_10 = arith.constant 0.000000e+00 : f32
    %10 = vector.broadcast %cst_10 : f32 to vector<32x128xf32>
    %11 = arith.maximumf %9, %10 : vector<32x128xf32>
    %c0_11 = arith.constant 0 : index
    %c0_12 = arith.constant 0 : index
    %12 = vector.load %arg6[%c0_11, %c0_12] : memref<32x128xf32, #tpu.memory_space<vmem>>, vector<32x128xf32>
    tpu.vector_store %arg6[%c0_11, %c0_12], %11 {strides = array<i32>} : memref<32x128xf32, #tpu.memory_space<vmem>>, vector<32x128xf32>,
    return
  }
  func.func @transform_0(%arg0: i32) -> (i32, i32) {
    %c0_i32 = arith.constant 0 : i32
    %c0_i32_0 = arith.constant 0 : i32
    return %arg0, %c0_i32 : i32, i32
  }
  func.func @transform_1(%arg0: i32) -> (i32, i32) {
    %c0_i32 = arith.constant 0 : i32
    %c0_i32_0 = arith.constant 0 : i32
    return %arg0, %c0_i32 : i32, i32
  }
  func.func @transform_2(%arg0: i32) -> (i32, i32) {
    %c0_i32 = arith.constant 0 : i32
    %c0_i32_0 = arith.constant 0 : i32
    %c0_i32_1 = arith.constant 0 : i32
    return %c0_i32, %c0_i32_0 : i32, i32
  }
  func.func @transform_3(%arg0: i32) -> (i32, i32) {
    %c0_i32 = arith.constant 0 : i32
    %c0_i32_0 = arith.constant 0 : i32
    %c0_i32_1 = arith.constant 0 : i32
    return %c0_i32, %c0_i32_0 : i32, i32
  }
  func.func @transform_4(%arg0: i32) -> (i32, i32) {
    %c0_i32 = arith.constant 0 : i32
    %c0_i32_0 = arith.constant 0 : i32
    %c0_i32_1 = arith.constant 0 : i32
    return %c0_i32, %c0_i32_0 : i32, i32
  }
  func.func @transform_5(%arg0: i32) -> (i32, i32) {
    %c0_i32 = arith.constant 0 : i32
    %c0_i32_0 = arith.constant 0 : i32
    return %arg0, %c0_i32 : i32, i32
  }
}

</mosaic_0001>

<bundles_post_ra>
// kernel: tpu_custom_call.1
= control target key start
LH: loop header
LB: loop body
LE: loop exit
PB: predicated region body
PF: predicated region fallthrough
CT: control target
= control target key end

     0   :  { %7 = vsyncpa [#allocation3], 0  ;;  %s633_s0 = inlined_call_operand.hbm [shape: f32[16,128], index: 0, kind: input, shape index: {}]   ;;  %s634_s1 = inlined_call_operand.hbm [shape: f32[8,128], index: 1, kind: input, shape index: {}]   ;;  %s635_s2 = inlined_call_operand.hbm [shape: f32[16,128], index: 2, kind: output, shape index: {}]  }
   0x1   :  { %9 = vsyncpa [#allocation3 + $0x1], 0 }
   0x2   :  { %10 = vsyncpa [#allocation6], 0 }
   0x3   :  { %11 = vsyncpa [#allocation4], 0 }
   0x4   :  { %13 = vsyncpa [#allocation4 + $0x1], 0  ;;  %s495_s9 = smov 0   ;;  %s497_s10 = smov 0  }
   0x5   :  { %s499_s11 = smov 0   ;;  %s501_s12 = smov 0  }
   0x6 LB: > { %s516_s13 = sadd.s32 4294967295, %s477_s12   ;;  %s276_s14 = sadd.s32 4294967294, %s477_s12   ;;  %s477_s12 = sphi %s501_s12, %s645_s12   ;;  %s473_s11 = sphi %s499_s11, %s644_s11   ;;  %s469_s10 = sphi %s497_s10, %s643_s10   ;;  %s465_s9 = sphi %s495_s9, %s642_s9  }
   0x7   : > { %p39_p0 = scmp.ne.s32.totalorder %s469_s10, %s465_s9  ;;  %p40_p1 = scmp.eq.s32.totalorder %s516_s13, 0 }
   0x8   : > { %p84_p2 = scmp.eq.s32.totalorder %s516_s13, 1  ;;  %p90_p3 = scmp.eq.s32.totalorder %s276_s14, 1 }
   0x9   : > { %p525_p4 = por %p40_p1, %p39_p0  ;;  %p277_p5 = scmp.ge.s32.totalorder %s477_s12, 1 }
   0xa   : > { %p530_p6 = por %p90_p3, %p39_p0  ;;  %p97_p7 = scmp.lt.s32.totalorder %s477_s12, 3 }
   0xb   : > { %s109_s19 = sshll.u32 %s634_s1, 4  ;;  %s479_s21 = smov [#allocation5]   ;;  %s110_s19 = int_to_ptr.hbm [resolvable:$true] %s109_s19 }
   0xc   : > { %p538_p8 = pnand %p277_p5, %p97_p7  ;;  %s111_s22 = sshll.u32 %s479_s21, 4  ;;  %s112_s22 = int_to_ptr.vmem [resolvable:$true] %s111_s22 }
   0xd   : > { %s548_s23 = sadd.s32 1, %s477_s12   ;;  %s26_s24 = sadd.s32 1, %s473_s11 }
   0xe   : > { %p298_p10 = pneg %p538_p8  ;;  %s23_s25 = ssub.s32 %s477_s12, %s548_s23 }
   0xf   : > { %p24_p12 = scmp.eq.s32.totalorder %s23_s25, 0  ;;  %p33_p13 = scmp.ne.s32.totalorder %s473_s11, %s469_s10 }
  0x10   : > { %p299_p11 = pnand %p298_p10, %p40_p1  ;;  %p34_p0 = scmp.eq.s32.totalorder %s477_s12, 0 }
  0x11   : > { %s557_s26 = scalar_select %p24_p12, %s473_s11, %s26_s24  }
  0x12   : > { %301 = dma.hbm_to_vmem [thread:$0]  (!%p299_p11), %s110_s19, 128, %s112_s22, [#allocation6]  }
  0x13   : > { %p561_p3 = por %p84_p2, %p33_p13  ;;  %p311_p5 = scmp.lt.s32.totalorder %s477_s12, 2 }
  0x14   : > { %s122_s28 = sand.u32 1, %s473_s11   ;;  %s281_s29 = sshll.u32 %s477_s12, 3 }
  0x15   : > { %p35_p7 = por %p34_p0, %p33_p13  ;;  %s280_s30 = sshll.u32 %s122_s28, 3 }
  0x16   : > { %s130_s5 = scalar_lea.hbm %s633_s0, %s281_s29  ;;  %s126_s7 = scalar_lea.vmem [#allocation2], %s280_s30 }
  0x17   : > { %s132_s6 = sshll.u32 %s130_s5, 4  ;;  %s134_s8 = sshll.u32 %s126_s7, 4  ;;  %s133_s6 = int_to_ptr.hbm [resolvable:$true] %s132_s6  ;;  %s135_s8 = int_to_ptr.vmem [resolvable:$true] %s134_s8 }
  0x18   : > { %p571_p10 = pnand %p311_p5, %p35_p7  ;;  %s123_s17 = scalar_lea.sflag [#allocation3], %s122_s28 }
  0x19   : > { %s377_s18 = sshra.s32 %s133_s6, 4  ;;  %s384_s24 = scalar_lea.hbm %s633_s0, 16  ;;  %s378_s18 = int_to_ptr.hbm [resolvable:$true] %s377_s18 }
  0x1a   : > { %s379_s19 = scalar_lea.hbm %s378_s18, 8  ;;  %p381_p11 = pneg %p571_p10 }
  0x1b   : > { %p380_p2 = scmp.ne.s32.totalorder %s378_s18, %s379_s19  ;;  %p385_p0 = scmp.lt.s32.totalorder %s378_s18, %s633_s0 }
  0x1c   : > { %p386_p5 = scmp.lt.s32.totalorder %s384_s24, %s379_s19 }
  0x1d   : > { %p382_p12 = pnand %p381_p11, %p380_p2 }
  0x1e   : > { %p387_p7 = por %p386_p5, %p385_p0 }
  0x1f   : > { %p383_p13 = pneg %p382_p12 }
  0x21   : > { %p388_p9 = pnand %p387_p7, %p383_p13 }
  0x23   : > { %391 = shalt.err (!%p388_p9)
}
  0x24   : > { %305 = dma.hbm_to_vmem [thread:$0]  (!%p571_p10), %s133_s6, 128, %s135_s8, %s123_s17  }
  0x25   : > { %143 = sbr.rel (%p538_p8) target bundleno = 60 (0x3c), region = 28  ;;  %s588_s28 = sand.u32 (!%p538_p8), 1, %s469_s10  }
  0x26   : > { %s283_s30 = sshll.u32 (!%p538_p8), %s588_s28, 3  ;;  %s146_s3 = scalar_lea.sflag (!%p538_p8), [#allocation3], %s588_s28 }
  0x27   : > { %s149_s4 = scalar_lea.vmem (!%p538_p8), [#allocation2], %s283_s30 }
  0x2a   : > { %452 = dma.done.wait (%p525_p4), %s146_s3, 128  }
  0x2b   : > { %454 = vsyncadd (%p525_p4), %s146_s3, 4294967168 }
  0x2c   : > { %456 = dma.done.wait (%p40_p1), [#allocation6], 128  }
  0x2d   : > { %458 = vsyncadd (%p40_p1), [#allocation6], 4294967168  ;;  %s287_s20 = sshll.u32 %s516_s13, 3  ;;  %s175_s8 = scalar_lea.vmem [#allocation7], %s283_s30  ;;  %v176_v0 = vld [vmem:[%s149_s4] sm:$0xff]  ;;  %v177_v1 = vld [vmem:[#allocation5] sm:$0xff] }
  0x2e   : > { %s191_s7 = scalar_lea.hbm %s635_s2, %s287_s20  ;;  %s193_s14 = sshll.u32 %s175_s8, 4  ;;  %v178_v2 = vadd.f32 %v177_v1, %v176_v0  ;;  %s194_s14 = int_to_ptr.vmem [resolvable:$true] %s193_s14 }
  0x2f   : > { %s195_s17 = sshll.u32 %s191_s7, 4  ;;  %s181_s15 = scalar_lea.sflag [#allocation4], %s588_s28  ;;  %s196_s17 = int_to_ptr.hbm [resolvable:$true] %s195_s17 }
  0x30   : > { %179 = vst [vmem:[%s175_s8] sm:$0xff] %v178_v2  ;;  %s421_s18 = sshra.s32 %s196_s17, 4  ;;  %s427_s22 = scalar_lea.hbm %s635_s2, 16  ;;  %s422_s18 = int_to_ptr.hbm [resolvable:$true] %s421_s18 }
  0x31   : > { %s423_s19 = scalar_lea.hbm %s422_s18, 8  ;;  %p428_p9 = scmp.lt.s32.totalorder %s422_s18, %s635_s2 }
  0x32   : > { %p424_p1 = scmp.ne.s32.totalorder %s422_s18, %s423_s19  ;;  %p429_p10 = scmp.lt.s32.totalorder %s427_s22, %s423_s19 }
  0x34   : > { %p425_p4 = pnand %p424_p1, %p561_p3  ;;  %p430_p2 = por %p429_p10, %p428_p9 }
  0x36   : > { %p426_p8 = pneg %p425_p4 }
  0x38   : > { %p431_p11 = pnand %p430_p2, %p426_p8 }
  0x3a   : > { %434 = shalt.err (!%p431_p11)
}
  0x3b   : > { %296 = dma.vmem_to_hbm [thread:$0]  (%p561_p3), %s194_s14, 128, %s196_s17, %s181_s15  }
  0x3c PF: > { %s207_s29 = sand.u32 1, %s465_s9   ;;  %p641_p12 = scmp.ge.s32.totalorder %s477_s12, 2 }
  0x3d   : > { %s208_s28 = scalar_lea.sflag [#allocation4], %s207_s29 }
  0x3e   : > { %p307_p13 = pnand %p641_p12, %p530_p6 }
  0x40   : > { %p308_p0 = pneg %p307_p13 }
  0x42   : > { %460 = dma.done.wait (%p308_p0), %s208_s28, 128  }
  0x43   : > { %462 = vsyncadd (%p308_p0), %s208_s28, 4294967168  ;;  %p16_p5 = scmp.ge.s32.totalorder %s548_s23, 4   ;;  %s642_s9 = smov %s469_s10 }
  0x44   : > { %s643_s10 = smov %s473_s11  ;;  %s644_s11 = smov %s557_s26 }
  0x45   : > { %s645_s12 = smov %s548_s23  ;;  %18 = sbr.rel (!%p16_p5) target bundleno = 6 (0x6), region = 77 }
  0x4a   :  { %214 = vsyncpa [#allocation3], 1 }
  0x4b   :  { %216 = vsyncpa [#allocation3 + $0x1], 1 }
  0x4c   :  { %217 = vsyncpa [#allocation6], 1 }
  0x4d   :  { %218 = vsyncpa [#allocation4], 1 }
  0x4e   :  { %220 = vsyncpa [#allocation4 + $0x1], 1 }

// kernel: _residual_block_forward.2
= control target key start
LH: loop header
LB: loop body
LE: loop exit
PB: predicated region body
PF: predicated region fallthrough
CT: control target
= control target key end

     0   :  { %s365_s12 = smov 0   ;;  %s403_s0 = inlined_call_operand.vmem [shape: f32[128,36], index: 0, kind: input, shape index: {}]   ;;  %s404_s1 = inlined_call_operand.vmem [shape: f32[36,128], index: 1, kind: input, shape index: {}]   ;;  %s405_s2 = inlined_call_operand.vmem [shape: f32[1,128], index: 2, kind: input, shape index: {}]   ;;  %s406_s3 = inlined_call_operand.vmem [shape: f32[128,128], index: 3, kind: output, shape index: {}]  }
   0x1 LB: > { %s297_s13 = sadd.s32 4294967295, %s343_s12   ;;  %p301_p0 = scmp.ge.s32.totalorder %s343_s12, 1  ;;  %s343_s12 = sphi %s365_s12, %s13_s12  }
   0x2   : > { %p138_p1 = scmp.lt.s32.totalorder %s343_s12, 5 }
   0x4   : > { %p139_p2 = pnand %p301_p0, %p138_p1 }
   0x5   : > { %s302_s18 = sshll.u32 (!%p139_p2), %s297_s13, 2 }
   0x6   : > { %142 = sbr.rel (%p139_p2) target bundleno = 159 (0x9f), region = 32  ;;  %p163_p3 = scmp.lt.s32.totalorder (!%p139_p2), %s302_s18, 15 }
   0xb   : > { %v182_v0 = vld [vmem:[%s404_s1 + $0x20] sm:$0xf]  ;;  %vm200_vm0 = vcmask 1043456   ;;  %v181_v1 = vld [vmem:[%s404_s1 + $0x18] sm:$0xff]  ;;  %v180_v2 = vld [vmem:[%s404_s1 + $0x10] sm:$0xff]  ;;  %s408_s18 = smov (!%p163_p3, %s302_s18), 15 }
   0xc   : > { %314 = vmatpush.msk.msra.mxu2 %vm200_vm0, %v182_v0  ;;  %315 = vmatpush.msk.msra.mxu3 %vm200_vm0, %v182_v0  ;;  %v179_v3 = vld [vmem:[%s404_s1 + $0x8] sm:$0xff]  ;;  %s303_s23 = sshll.u32 %s408_s18, 3  ;;  %v178_v4 = vld [vmem:[%s404_s1] sm:$0xff]  ;;  %vm187_vm1 = vcmask 293888  }
   0xd   : > { %306 = vmatpush.msk.msra.mxu0 %vm200_vm0, %v182_v0  ;;  %313 = vmatpush.msk.msra.mxu1 %vm200_vm0, %v182_v0  ;;  %s166_s28 = scalar_lea.vmem %s403_s0, %s303_s23  ;;  %v336_v9 = vld [vmem:[%s405_s2] ss:$0 sm:$0xff]  ;;  %s172_s6 = scalar_lea.vmem %s406_s3, %s303_s23 }
   0xe   : > { %317 = vmatpush.msra.mxu2 %v181_v1  ;;  %318 = vmatpush.msra.mxu3 %v181_v1  ;;  %v176_v5 = vld [vmem:[%s166_s28 + $0x10] sm:$0xff]  ;;  %v177_v6 = vld [vmem:[%s166_s28 + $0x18] sm:$0xff]  ;;  %v174_v7 = vld [vmem:[%s166_s28] sm:$0xff] }
   0xf   : > { %216 = vmatpush.msra.mxu0 %v181_v1  ;;  %316 = vmatpush.msra.mxu1 %v181_v1  ;;  %v175_v8 = vld [vmem:[%s166_s28 + $0x8] sm:$0xff] }
  0x10   : > { %320 = vmatpush.msra.mxu2 %v180_v2  ;;  %321 = vmatpush.msra.mxu3 %v180_v2 }
  0x11   : > { %217 = vmatpush.msra.mxu0 %v180_v2  ;;  %319 = vmatpush.msra.mxu1 %v180_v2 }
  0x12   : > { %323 = vmatpush.msra.mxu2 %v179_v3  ;;  %324 = vmatpush.msra.mxu3 %v179_v3 }
  0x13   : > { %218 = vmatpush.msra.mxu0 %v179_v3  ;;  %322 = vmatpush.msra.mxu1 %v179_v3 }
  0x14   : > { %326 = vmatpush.msra.mxu2 %v178_v4  ;;  %327 = vmatpush.msra.mxu3 %v178_v4 }
  0x15   : > { %309 = vmatmul.msk.f32.vlgmr.msra.gmra.mxu2 %vm187_vm1, %v176_v5  ;;  %310 = vmatmul.msk.f32.vlgmr.msra.gmra.mxu3 %vm187_vm1, %v177_v6 }
  0x16   : > { %219 = vmatpush.msra.mxu0 %v178_v4  ;;  %325 = vmatpush.msra.mxu1 %v178_v4 }
  0x17   : > { %307 = vmatmul.msk.f32.vlgmr.msra.gmra.mxu0 %vm187_vm1, %v174_v7  ;;  %308 = vmatmul.msk.f32.vlgmr.msra.gmra.mxu1 %vm187_vm1, %v175_v8 }
  0x94   : > { %v221_v10 = vpop.f32.mrf.mxu0  ;;  %v224_v11 = vpop.f32.mrf.mxu1 }
  0x95   : > { %v222_v12 = vadd.f32 %v336_v9, %v221_v10  ;;  %v225_v13 = vadd.f32 %v336_v9, %v224_v11 }
  0x97   : > { %v233_v14 = vmax.f32 %v222_v12, 0.0  ;;  %v234_v15 = vmax.f32 %v225_v13, 0.0 }
  0x98   : > { %v227_v16 = vpop.f32.mrf.mxu2  ;;  %v230_v17 = vpop.f32.mrf.mxu3 }
  0x99   : > { %237 = vst [vmem:[%s172_s6] sm:$0xff] %v233_v14  ;;  %v228_v18 = vadd.f32 %v336_v9, %v227_v16  ;;  %v231_v19 = vadd.f32 %v336_v9, %v230_v17 }
  0x9a   : > { %238 = vst [vmem:[%s172_s6 + $0x8] sm:$0xff] %v234_v15 }
  0x9b   : > { %v235_v20 = vmax.f32 %v228_v18, 0.0  ;;  %v236_v21 = vmax.f32 %v231_v19, 0.0 }
  0x9d   : > { %239 = vst [vmem:[%s172_s6 + $0x10] sm:$0xff] %v235_v20 }
  0x9e   : > { %240 = vst [vmem:[%s172_s6 + $0x18] sm:$0xff] %v236_v21 }
  0x9f PF: > { %s13_s12 = sadd.s32 1, %s343_s12  }
  0xa0   : > { %p10_p4 = scmp.ge.s32.totalorder %s13_s12, 6  }
  0xa2   :  { %12 = sbr.rel (!%p10_p4) target bundleno = 1 (0x1), region = 62 }

// kernel: _residual_block_forward.3
= control target key start
LH: loop header
LB: loop body
LE: loop exit
PB: predicated region body
PF: predicated region fallthrough
CT: control target
= control target key end

     0   :  { %s527_s18 = smov 0   ;;  %s595_s0 = inlined_call_operand.vmem [shape: f32[128,72], index: 0, kind: input, shape index: {}]   ;;  %s596_s1 = inlined_call_operand.vmem [shape: f32[128,4], index: 1, kind: input, shape index: {}]   ;;  %s597_s2 = inlined_call_operand.vmem [shape: f32[72,128], index: 2, kind: input, shape index: {}]   ;;  %s598_s3 = inlined_call_operand.vmem [shape: f32[4,128], index: 3, kind: input, shape index: {}]   ;;  %s599_s4 = inlined_call_operand.vmem [shape: f32[1,128], index: 4, kind: input, shape index: {}]   ;;  %s600_s5 = inlined_call_operand.vmem [shape: f32[128,128], index: 5, kind: output, shape index: {}]  }
   0x1 LB: > { %s440_s19 = sadd.s32 4294967295, %s495_s18   ;;  %p444_p0 = scmp.ge.s32.totalorder %s495_s18, 1  ;;  %s495_s18 = sphi %s527_s18, %s15_s18  }
   0x2   : > { %p199_p1 = scmp.lt.s32.totalorder %s495_s18, 5 }
   0x4   : > { %p200_p2 = pnand %p444_p0, %p199_p1 }
   0x5   : > { %s445_s24 = sshll.u32 (!%p200_p2), %s440_s19, 2 }
   0x6   : > { %203 = sbr.rel (%p200_p2) target bundleno = 177 (0xb1), region = 40  ;;  %p233_p3 = scmp.lt.s32.totalorder (!%p200_p2), %s445_s24, 15 }
   0xb   : > { %v262_v0 = vld [vmem:[%s597_s2 + $0x40] sm:$0xff]  ;;  %v261_v1 = vld [vmem:[%s597_s2 + $0x38] sm:$0xff]  ;;  %vm281_vm0 = vcmask 1043456   ;;  %v260_v3 = vld [vmem:[%s597_s2 + $0x30] sm:$0xff]  ;;  %s602_s24 = smov (!%p233_p3, %s445_s24), 15  ;;  %vm268_vm1 = vcmask 31744  }
   0xc   : > { %334 = vmatpush.msra.mxu1 %v262_v0  ;;  %462 = vmatpush.msra.mxu2 %v262_v0  ;;  %v267_v2 = vld [vmem:[%s598_s3] sm:$0xf]  ;;  %v259_v4 = vld [vmem:[%s597_s2 + $0x28] sm:$0xff]  ;;  %s550_s6 = sshll.u32 %s602_s24, 3  ;;  %v257_v7 = vld [vmem:[%s597_s2 + $0x18] sm:$0xff]  ;;  %vm314_vm2 = vcmask 588800  }
   0xd   : > { %463 = vmatpush.msra.mxu3 %v262_v0  ;;  %451 = vmatpush.msk.msra.mxu0 %vm281_vm0, %v267_v2  ;;  %s556_s9 = scalar_lea.vmem %s596_s1, %s550_s6  ;;  %v258_v5 = vld [vmem:[%s597_s2 + $0x20] sm:$0xff]  ;;  %v256_v8 = vld [vmem:[%s597_s2 + $0x10] sm:$0xff]  ;;  %v255_v9 = vld [vmem:[%s597_s2 + $0x8] sm:$0xff]  ;;  %s236_s21 = scalar_lea.vmem %s595_s0, %s550_s6 }
   0xe   : > { %335 = vmatpush.msra.mxu1 %v261_v1  ;;  %464 = vmatpush.msra.mxu2 %v261_v1  ;;  %v263_v6 = vld [vmem:[%s556_s9] sm:$0xff]  ;;  %v264_v10 = vld [vmem:[%s556_s9 + $0x8] sm:$0xff]  ;;  %v252_v14 = vld [vmem:[%s236_s21 + $0x10] sm:$0xff]  ;;  %s248_s28 = scalar_lea.vmem %s600_s5, %s550_s6 }
   0xf   : > { %465 = vmatpush.msra.mxu3 %v261_v1  ;;  %452 = vmatmul.msk.f32.vlgmr.msra.gmra.mxu0 %vm268_vm1, %v263_v6  ;;  %v254_v11 = vld [vmem:[%s597_s2] sm:$0xff]  ;;  %v251_v13 = vld [vmem:[%s236_s21 + $0x8] sm:$0xff]  ;;  %v265_v15 = vld [vmem:[%s556_s9 + $0x10] sm:$0xff] }
  0x10   : > { %336 = vmatpush.msra.mxu1 %v260_v3  ;;  %466 = vmatpush.msra.mxu2 %v260_v3  ;;  %v250_v12 = vld [vmem:[%s236_s21] sm:$0xff]  ;;  %v253_v16 = vld [vmem:[%s236_s21 + $0x18] sm:$0xff] }
  0x11   : > { %467 = vmatpush.msra.mxu3 %v260_v3  ;;  %v266_v17 = vld [vmem:[%s556_s9 + $0x18] sm:$0xff]  ;;  %v488_v20 = vld [vmem:[%s599_s4] ss:$0 sm:$0xff] }
  0x12   : > { %337 = vmatpush.msra.mxu1 %v259_v4  ;;  %468 = vmatpush.msra.mxu2 %v259_v4 }
  0x13   : > { %469 = vmatpush.msra.mxu3 %v259_v4 }
  0x14   : > { %338 = vmatpush.msra.mxu1 %v258_v5  ;;  %470 = vmatpush.msra.mxu2 %v258_v5 }
  0x15   : > { %471 = vmatpush.msra.mxu3 %v258_v5 }
  0x16   : > { %339 = vmatpush.msra.mxu1 %v257_v7  ;;  %472 = vmatpush.msra.mxu2 %v257_v7 }
  0x17   : > { %473 = vmatpush.msra.mxu3 %v257_v7  ;;  %453 = vmatmul.msk.f32.gmra.mxu0 %vm268_vm1, %v264_v10 }
  0x18   : > { %340 = vmatpush.msra.mxu1 %v256_v8  ;;  %474 = vmatpush.msra.mxu2 %v256_v8 }
  0x19   : > { %475 = vmatpush.msra.mxu3 %v256_v8 }
  0x1a   : > { %341 = vmatpush.msra.mxu1 %v255_v9  ;;  %476 = vmatpush.msra.mxu2 %v255_v9 }
  0x1b   : > { %477 = vmatpush.msra.mxu3 %v255_v9 }
  0x1c   : > { %342 = vmatpush.msra.mxu1 %v254_v11  ;;  %478 = vmatpush.msra.mxu2 %v254_v11 }
  0x1d   : > { %479 = vmatpush.msra.mxu3 %v254_v11  ;;  %456 = vmatmul.msk.f32.vlgmr.msra.gmra.mxu1 %vm314_vm2, %v250_v12 }
  0x1e   : > { %457 = vmatmul.msk.f32.vlgmr.msra.gmra.mxu2 %vm314_vm2, %v251_v13  ;;  %458 = vmatmul.msk.f32.vlgmr.msra.gmra.mxu3 %vm314_vm2, %v252_v14 }
  0x1f   : > { %454 = vmatmul.msk.f32.gmra.mxu0 %vm268_vm1, %v265_v15 }
  0x26   : > { %459 = vmatmul.msk.f32.gmra.mxu3 %vm314_vm2, %v253_v16 }
  0x27   : > { %455 = vmatmul.msk.f32.gmra.mxu0 %vm268_vm1, %v266_v17 }
  0x8c   : > { %v302_v18 = vpop.f32.mrf.mxu0 }
  0x94   : > { %v305_v19 = vpop.f32.mrf.mxu0 }
  0x9a   : > { %v344_v21 = vpop.f32.mrf.mxu1 }
  0x9b   : > { %v345_v22 = vadd.f32 %v344_v21, %v302_v18 }
  0x9c   : > { %v308_v25 = vpop.f32.mrf.mxu0 }
  0x9d   : > { %v360_v23 = vadd.f32 %v488_v20, %v345_v22 }
  0x9f   : > { %v364_v24 = vmax.f32 %v360_v23, 0.0 }
  0xa1   : > { %368 = vst [vmem:[%s248_s28] sm:$0xff] %v364_v24  ;;  %v347_v26 = vpop.f32.mrf.mxu2  ;;  %v350_v27 = vpop.f32.mrf.mxu3 }
  0xa2   : > { %v348_v28 = vadd.f32 %v347_v26, %v305_v19  ;;  %v351_v29 = vadd.f32 %v350_v27, %v308_v25 }
  0xa4   : > { %v361_v30 = vadd.f32 %v488_v20, %v348_v28  ;;  %v362_v31 = vadd.f32 %v488_v20, %v351_v29  ;;  %v311_v34 = vpop.f32.mrf.mxu0 }
  0xa6   : > { %v365_v32 = vmax.f32 %v361_v30, 0.0  ;;  %v366_v33 = vmax.f32 %v362_v31, 0.0 }
  0xa8   : > { %369 = vst [vmem:[%s248_s28 + $0x8] sm:$0xff] %v365_v32 }
  0xa9   : > { %370 = vst [vmem:[%s248_s28 + $0x10] sm:$0xff] %v366_v33  ;;  %v353_v35 = vpop.f32.mrf.mxu3 }
  0xaa   : > { %v354_v36 = vadd.f32 %v353_v35, %v311_v34 }
  0xac   : > { %v363_v37 = vadd.f32 %v488_v20, %v354_v36 }
  0xae   : > { %v367_v38 = vmax.f32 %v363_v37, 0.0 }
  0xb0   : > { %371 = vst [vmem:[%s248_s28 + $0x18] sm:$0xff] %v367_v38 }
  0xb1 PF: > { %s15_s18 = sadd.s32 1, %s495_s18  }
  0xb2   : > { %p12_p4 = scmp.ge.s32.totalorder %s15_s18, 6  }
  0xb4   :  { %14 = sbr.rel (!%p12_p4) target bundleno = 1 (0x1), region = 73 }

</bundles_post_ra>
